<compile_context>
chip_gen: v7x
topology: tpu7x:2x2x1
jax: 0.10.0
libtpu: 0.0.40
codegen_flags: <defaults>
</compile_context>

<pallas_src>
from functools import partial

import jax
import jax.numpy as jnp
import numpy as np
from jax.experimental import pallas as pl
from jax.experimental.pallas import tpu as pltpu

LANE = 128
KMAX = 5          # largest conv kernel height
MAX_PAD = 4       # = KMAX - 1, PyTorch padding of the widest conv


def _round_up(x, m):
    return ((x + m - 1) // m) * m


# ----------------------------- Pallas kernel ------------------------------ #
def textcnn_kernel(x_ref, wc_ref, bc_ref, mask_ref, fcw_ref, fcb_ref, o_ref,
                   xp_ref, *, seq_len, t_pad, emb_pad, c_pad):
    """Fused conv(k=3,4,5) + max-pool-over-time + bias/ReLU + Linear.

    x_ref    : (Bt, L, Ep)          compute dtype  embedded tokens
    wc_ref   : (5, Ep, Cp)          compute dtype  per-tap combined conv weights
    bc_ref   : (1, Cp)              f32            concatenated conv biases
    mask_ref : (T_pad, Cp)          f32            0 valid / -1e30 invalid
    fcw_ref  : (Cp, 128)            compute dtype  fc weight, lane-padded
    fcb_ref  : (1, 128)             f32            fc bias, lane-padded
    o_ref    : (Bt, 128)            f32            lane-padded logits
    xp_ref   : (Bt, T_pad+4, Ep)    compute dtype  VMEM halo scratch
    """
    L, T, Ep, C = seq_len, t_pad, emb_pad, c_pad
    bt = x_ref.shape[0]

    x = x_ref[...]                                            # (Bt, L, Ep)

    # Build the zero conv halo directly in the VMEM scratch: only the halo
    # rows plus one store of the real rows — no concatenate / im2col copies.
    # (Halo is re-zeroed every step so correctness never depends on grid
    #  execution order / megacore sharding.)
    xp_ref[:, 0:MAX_PAD, :] = jnp.zeros((bt, MAX_PAD, Ep), x.dtype)
    xp_ref[:, MAX_PAD + L:MAX_PAD + T, :] = jnp.zeros((bt, T - L, Ep), x.dtype)
    xp_ref[:, MAX_PAD:MAX_PAD + L, :] = x

    # Accumulator seeded with the resident additive validity mask, then one
    # large-M MXU matmul per tap of the unified 5-tap window, f32 accumulate.
    acc = jnp.tile(mask_ref[...], (bt, 1))                    # (Bt*T, Cp) f32
    for k in range(KMAX):
        lhs = xp_ref[:, k:k + T, :].reshape(bt * T, Ep)
        acc = acc + jnp.dot(lhs, wc_ref[k],
                            preferred_element_type=jnp.float32)

    # Max-pool over time first, then bias + ReLU on the tiny pooled tensor
    # (max_t ReLU(c_t + b) == ReLU(max_t c_t + b) for a per-channel bias).
    pooled = jnp.max(acc.reshape(bt, T, C), axis=1)           # (Bt, Cp) f32
    pooled = jnp.maximum(pooled + bc_ref[...], 0.0)

    # Dropout is identity at inference time.
    logits = jnp.dot(pooled.astype(fcw_ref.dtype), fcw_ref[...],
                     preferred_element_type=jnp.float32) + fcb_ref[...]
    o_ref[...] = logits                                       # lane-dense store


# ----------------------- generation-aware VMEM sizing ---------------------- #
def _vmem_budget_bytes():
    """(tile-sizing budget, Mosaic vmem_limit) derived from physical VMEM."""
    try:
        cap = int(pltpu.get_tpu_info().vmem_capacity_bytes)
    except Exception:
        cap = 0
    if cap <= 0:
        cap = 64 * 1024 * 1024          # conservative default (v7x per-TC)
    limit = min(int(cap * 0.80), cap - (8 << 20))   # leave compiler headroom
    budget = int(cap * 0.55)                        # what we size tiles from
    return budget, max(limit, 16 << 20)


def _pick_batch_tile(batch, seq_len, emb_pad, t_pad, c_pad, n_out,
                     dtype_bytes, budget_bytes):
    """Largest batch tile (multiple of 8) fitting the budget, capped so that
    larger batches keep >=2-4 grid steps (megacore / pipelining)."""
    halo_rows = t_pad + MAX_PAD
    per_row = (
        2 * seq_len * emb_pad * dtype_bytes        # x tile, double-buffered
        + halo_rows * emb_pad * dtype_bytes        # halo scratch
        + 3 * t_pad * c_pad * 4                    # f32 accumulator + temps
        + 2 * c_pad * 4                            # pooled
        + 2 * n_out * 4                            # output tile, dbl-buffered
    )
    fixed = 2 * (
        (KMAX * emb_pad * c_pad + c_pad * n_out) * dtype_bytes   # weights
        + (t_pad * c_pad + c_pad + n_out) * 4                    # mask/biases
    )
    usable = max(budget_bytes - fixed, 8 * per_row)
    bt = max(8, int(usable // per_row) // 8 * 8)

    target_steps = 4 if batch >= 32 else (2 if batch > 8 else 1)
    if target_steps > 1:
        cap_for_steps = _round_up((batch + target_steps - 1) // target_steps, 8)
        bt = min(bt, max(8, cap_for_steps))
    bt = min(bt, _round_up(batch, 8))              # don't over-pad tiny batches
    bt = min(bt, 1024)
    return int(bt)


# ------------------------------ JAX wrapper -------------------------------- #
def textcnn_forward(tokens, params, *, seq_len, n_labels, n_filters,
                    compute_dtype=jnp.bfloat16):
    """tokens: (B, L) int32 ids. Returns logits (B, n_labels) f32."""
    emb_table = params["embedding"]                     # (V, E) f32
    V, E = emb_table.shape
    F = n_filters
    B, L = tokens.shape
    assert L == seq_len

    Ep = _round_up(E, LANE)                             # lane-aligned emb dim
    C = 3 * F
    C_pad = _round_up(C, LANE)                          # lane-aligned channels
    T_pad = _round_up(L + MAX_PAD, 8)                   # sublane-aligned time
    n_out = _round_up(max(n_labels, 1), LANE)           # lane-dense logits

    # --- one-time (tiny) parameter packing -------------------------------- #
    # Pad + cast the table once so the gather directly yields the
    # lane-aligned compute-dtype activation (single HBM materialization).
    table = jnp.zeros((V, Ep), compute_dtype).at[:, :E].set(
        emb_table.astype(compute_dtype))

    # Per-tap combined conv weight: branch kh occupies taps (5-kh)..4 in its
    # own F-wide column block; unused taps / padded rows / padded cols are 0.
    wc = jnp.zeros((KMAX, Ep, C_pad), jnp.float32)
    for bi, kh in enumerate((3, 4, 5)):
        w = params[f"w{kh}"]                            # (kh, E, F)
        off = KMAX - kh
        wc = wc.at[off:, :E, bi * F:(bi + 1) * F].set(w)
    bc = jnp.zeros((1, C_pad), jnp.float32).at[:, :C].set(
        jnp.concatenate([params["b3"], params["b4"], params["b5"]], axis=1))

    # Resident additive validity mask: branch kh only has L+kh-1 valid
    # output positions; invalid positions get -1e30 before the max-pool.
    t_idx = jnp.arange(T_pad)[:, None]
    c_idx = jnp.arange(C_pad)[None, :]
    limit = L + 2 + jnp.minimum(c_idx // F, 2)          # L+2 / L+3 / L+4
    mask = jnp.where(t_idx < limit, 0.0, -1e30).astype(jnp.float32)

    # Lane-padded classifier.
    fcw = jnp.zeros((C_pad, n_out), jnp.float32).at[:C, :n_labels].set(
        params["fc_w"])
    fcb = jnp.zeros((1, n_out), jnp.float32).at[:, :n_labels].set(
        params["fc_b"])

    wc = wc.astype(compute_dtype)
    fcw = fcw.astype(compute_dtype)
    # Biases / mask stay f32 (elementwise work in f32; matmuls in compute dt).

    # --- batch tiling (generation-aware) ----------------------------------- #
    dtype_bytes = jnp.dtype(compute_dtype).itemsize
    budget, vmem_limit = _vmem_budget_bytes()
    bt = _pick_batch_tile(B, L, Ep, T_pad, C_pad, n_out, dtype_bytes, budget)
    b_padded = _round_up(B, bt)

    # Pad the cheap int32 ids, not the (B, L, Ep) activation.
    if b_padded != B:
        tokens = jnp.pad(tokens, ((0, b_padded - B), (0, 0)))
    x = table[tokens]                                   # (b_padded, L, Ep)
    # TODO(synk): fuse this gather into the kernel (scalar-prefetch ids +
    #             per-row DMA from the HBM table) to save one HBM round trip.

    kernel = partial(textcnn_kernel, seq_len=L, t_pad=T_pad, emb_pad=Ep,
                     c_pad=C_pad)

    out = pl.pallas_call(
        kernel,
        out_shape=jax.ShapeDtypeStruct((b_padded, n_out), jnp.float32),
        grid=(b_padded // bt,),
        in_specs=[
            pl.BlockSpec((bt, L, Ep), lambda b: (b, 0, 0)),            # x tile
            pl.BlockSpec((KMAX, Ep, C_pad), lambda b: (0, 0, 0)),      # resident
            pl.BlockSpec((1, C_pad), lambda b: (0, 0)),                # resident
            pl.BlockSpec((T_pad, C_pad), lambda b: (0, 0)),            # resident
            pl.BlockSpec((C_pad, n_out), lambda b: (0, 0)),            # resident
            pl.BlockSpec((1, n_out), lambda b: (0, 0)),                # resident
        ],
        out_specs=pl.BlockSpec((bt, n_out), lambda b: (b, 0)),
        scratch_shapes=[pltpu.VMEM((bt, T_pad + MAX_PAD, Ep), compute_dtype)],
        compiler_params=pltpu.CompilerParams(
            dimension_semantics=("parallel",),
            vmem_limit_bytes=int(vmem_limit)),
    )(x, wc, bc, mask, fcw, fcb)

    return out[:B, :n_labels]


# -------------------------- Parameter construction ------------------------- #
def init_params(key, *, vocab_size, embedding_size, n_filters, n_labels,
                padding_idx):
    ks = jax.random.split(key, 9)
    emb = jax.random.normal(ks[0], (vocab_size, embedding_size),
                            jnp.float32) * 0.1
    emb = emb.at[padding_idx].set(0.0)                  # padding_idx row = 0

    def conv_w(k, kh):
        # PyTorch conv weight is (F, 1, kh, E); store as (kh, E, F).
        w = jax.random.normal(k, (n_filters, 1, kh, embedding_size),
                              jnp.float32) * 0.05
        return jnp.transpose(w[:, 0], (1, 2, 0))        # (kh, E, F)

    return {
        "embedding": emb,
        "w3": conv_w(ks[1], 3),
        "b3": jax.random.normal(ks[2], (1, n_filters), jnp.float32) * 0.05,
        "w4": conv_w(ks[3], 4),
        "b4": jax.random.normal(ks[4], (1, n_filters), jnp.float32) * 0.05,
        "w5": conv_w(ks[5], 5),
        "b5": jax.random.normal(ks[6], (1, n_filters), jnp.float32) * 0.05,
        # PyTorch Linear weight (n_labels, 3F); store transposed (3F, n_labels).
        "fc_w": jax.random.normal(ks[7], (3 * n_filters, n_labels),
                                  jnp.float32) * 0.05,
        "fc_b": jax.random.normal(ks[8], (1, n_labels), jnp.float32) * 0.05,
    }


# ------------------------------ Reference ---------------------------------- #
def reference_forward(tokens, params, *, n_filters, n_labels):
    """Independent plain-JAX (lax.conv) reference mirroring the PyTorch code."""
    emb = params["embedding"][tokens]                   # (B, L, E)
    x = emb[:, None, :, :]                              # NCHW = (B, 1, L, E)

    def conv_pool(w_kef, b, kh):
        # lax kernel layout OIHW: (F, 1, kh, E)
        w = jnp.transpose(w_kef, (2, 0, 1))[:, None, :, :]
        y = jax.lax.conv_general_dilated(
            x, w, window_strides=(1, 1),
            padding=((kh - 1, kh - 1), (0, 0)),
            dimension_numbers=("NCHW", "OIHW", "NCHW"))  # (B, F, T, 1)
        y = y + b[0][None, :, None, None]
        y = jnp.maximum(y, 0.0)[:, :, :, 0]             # (B, F, T)
        return jnp.max(y, axis=2)                       # (B, F)

    p3 = conv_pool(params["w3"], params["b3"], 3)
    p4 = conv_pool(params["w4"], params["b4"], 4)
    p5 = conv_pool(params["w5"], params["b5"], 5)
    feat = jnp.concatenate([p3, p4, p5], axis=1)        # (B, 3F)
    return feat @ params["fc_w"] + params["fc_b"]


# --------------------------------- main ------------------------------------ #
if __name__ == "__main__":
    # Small, module-consistent shapes (model_name='rand' variant).
    B, L = 2, 8
    VOCAB, EMB = 50, 32
    N_FILTERS, N_LABELS = 32, 4
    PAD_IDX = 0

    key = jax.random.PRNGKey(0)
    k_tok, k_par = jax.random.split(key)
    tokens = jax.random.randint(k_tok, (B, L), 0, VOCAB, dtype=jnp.int32)
    params = init_params(k_par, vocab_size=VOCAB, embedding_size=EMB,
                         n_filters=N_FILTERS, n_labels=N_LABELS,
                         padding_idx=PAD_IDX)

    ref = reference_forward(tokens, params, n_filters=N_FILTERS,
                            n_labels=N_LABELS)

    # f32 operand path: tight check against the f32 lax.conv reference.
    logits_f32 = textcnn_forward(tokens, params, seq_len=L, n_labels=N_LABELS,
                                 n_filters=N_FILTERS,
                                 compute_dtype=jnp.float32)
    logits_f32 = jax.block_until_ready(logits_f32)
    np.testing.assert_allclose(np.asarray(logits_f32), np.asarray(ref),
                               rtol=1e-5, atol=1e-5)

    # bf16 operand path (production config on v6e/v7x): looser tolerance.
    logits_bf16 = textcnn_forward(tokens, params, seq_len=L, n_labels=N_LABELS,
                                  n_filters=N_FILTERS,
                                  compute_dtype=jnp.bfloat16)
    logits_bf16 = jax.block_until_ready(logits_bf16)
    np.testing.assert_allclose(np.asarray(logits_bf16), np.asarray(ref),
                               rtol=3e-2, atol=3e-2)

    print("KERNEL_OK")
</pallas_src>

<mosaic_0001>
module attributes {stable_mosaic.version = 11 : i64} {
  func.func @textcnn_kernel(%arg0: i32, %arg1: memref<8x8x128xf32, #tpu.memory_space<vmem>>, %arg2: memref<5x128x128xf32, #tpu.memory_space<vmem>>, %arg3: memref<1x128xf32, #tpu.memory_space<vmem>>, %arg4: memref<16x128xf32, #tpu.memory_space<vmem>>, %arg5: memref<128x128xf32, #tpu.memory_space<vmem>>, %arg6: memref<1x128xf32, #tpu.memory_space<vmem>>, %arg7: memref<8x128xf32, #tpu.memory_space<vmem>>, %arg8: memref<8x20x128xf32, #tpu.memory_space<vmem>>) attributes {dimension_semantics = [#tpu.dimension_semantics<parallel>], iteration_bounds = array<i64: 1>, scalar_prefetch = 0 : i64, scratch_operands = 1 : i64, tpu.core_type = #tpu.core_type<tc>, window_params = [{transform_indices = @transform_0, window_bounds = array<i64: 8, 8, 128>}, {pipeline_mode = #tpu.pipeline_mode<synchronous>, transform_indices = @transform_1, window_bounds = array<i64: 5, 128, 128>}, {pipeline_mode = #tpu.pipeline_mode<synchronous>, transform_indices = @transform_2, window_bounds = array<i64: 1, 128>}, {pipeline_mode = #tpu.pipeline_mode<synchronous>, transform_indices = @transform_3, window_bounds = array<i64: 16, 128>}, {pipeline_mode = #tpu.pipeline_mode<synchronous>, transform_indices = @transform_4, window_bounds = array<i64: 128, 128>}, {pipeline_mode = #tpu.pipeline_mode<synchronous>, transform_indices = @transform_5, window_bounds = array<i64: 1, 128>}, {transform_indices = @transform_6, window_bounds = array<i64: 8, 128>}]} {
    %c0 = arith.constant 0 : index
    %c0_0 = arith.constant 0 : index
    %c0_1 = arith.constant 0 : index
    %0 = vector.load %arg1[%c0, %c0_0, %c0_1] : memref<8x8x128xf32, #tpu.memory_space<vmem>>, vector<8x8x128xf32>
    %cst = arith.constant 0.000000e+00 : f32
    %1 = vector.broadcast %cst : f32 to vector<8x4x128xf32>
    %c0_2 = arith.constant 0 : index
    %c0_3 = arith.constant 0 : index
    %c0_4 = arith.constant 0 : index
    %2 = vector.load %arg8[%c0_2, %c0_3, %c0_4] : memref<8x20x128xf32, #tpu.memory_space<vmem>>, vector<8x4x128xf32>
    tpu.vector_store %arg8[%c0_2, %c0_3, %c0_4], %1 {strides = array<i32>} : memref<8x20x128xf32, #tpu.memory_space<vmem>>, vector<8x4x128xf32>,
    %cst_5 = arith.constant 0.000000e+00 : f32
    %3 = vector.broadcast %cst_5 : f32 to vector<8x8x128xf32>
    %c0_6 = arith.constant 0 : index
    %c12 = arith.constant 12 : index
    %c0_7 = arith.constant 0 : index
    %4 = vector.load %arg8[%c0_6, %c12, %c0_7] : memref<8x20x128xf32, #tpu.memory_space<vmem>>, vector<8x8x128xf32>
    tpu.vector_store %arg8[%c0_6, %c12, %c0_7], %3 {strides = array<i32>} : memref<8x20x128xf32, #tpu.memory_space<vmem>>, vector<8x8x128xf32>,
    %c0_8 = arith.constant 0 : index
    %c4 = arith.constant 4 : index
    %c0_9 = arith.constant 0 : index
    %5 = vector.load %arg8[%c0_8, %c4, %c0_9] : memref<8x20x128xf32, #tpu.memory_space<vmem>>, vector<8x8x128xf32>
    tpu.vector_store %arg8[%c0_8, %c4, %c0_9], %0 {strides = array<i32>} : memref<8x20x128xf32, #tpu.memory_space<vmem>>, vector<8x8x128xf32>,
    %c0_10 = arith.constant 0 : index
    %c0_11 = arith.constant 0 : index
    %6 = vector.load %arg4[%c0_10, %c0_11] : memref<16x128xf32, #tpu.memory_space<vmem>>, vector<16x128xf32>
    %7 = tpu.concatenate %6, %6, %6, %6, %6, %6, %6, %6 in 0 : vector<16x128xf32>, vector<16x128xf32>, vector<16x128xf32>, vector<16x128xf32>, vector<16x128xf32>, vector<16x128xf32>, vector<16x128xf32>, vector<16x128xf32> -> vector<128x128xf32>
    %c0_12 = arith.constant 0 : index
    %c0_13 = arith.constant 0 : index
    %c0_14 = arith.constant 0 : index
    %8 = vector.load %arg8[%c0_12, %c0_13, %c0_14] : memref<8x20x128xf32, #tpu.memory_space<vmem>>, vector<8x16x128xf32>
    %9 = vector.shape_cast %8 : vector<8x16x128xf32> to vector<128x128xf32>
    %c0_15 = arith.constant 0 : index
    %c0_16 = arith.constant 0 : index
    %c0_17 = arith.constant 0 : index
    %10 = vector.load %arg2[%c0_15, %c0_16, %c0_17] : memref<5x128x128xf32, #tpu.memory_space<vmem>>, vector<1x128x128xf32>
    %11 = vector.shape_cast %10 : vector<1x128x128xf32> to vector<128x128xf32>
    %cst_18 = arith.constant dense<0.000000e+00> : vector<128x128xf32>
    %12 = tpu.matmul %9, %11, %cst_18 {dimension_numbers = #tpu.dot_dimension_numbers<[1], [0], [0], [1], [0, 0, 1, 1], [], []>} : vector<128x128xf32>, vector<128x128xf32>, vector<128x128xf32> -> vector<128x128xf32>
    %13 = arith.addf %7, %12 : vector<128x128xf32>
    %c0_19 = arith.constant 0 : index
    %c1 = arith.constant 1 : index
    %c0_20 = arith.constant 0 : index
    %14 = vector.load %arg8[%c0_19, %c1, %c0_20] : memref<8x20x128xf32, #tpu.memory_space<vmem>>, vector<8x16x128xf32>
    %15 = vector.shape_cast %14 : vector<8x16x128xf32> to vector<128x128xf32>
    %c1_21 = arith.constant 1 : index
    %c0_22 = arith.constant 0 : index
    %c0_23 = arith.constant 0 : index
    %16 = vector.load %arg2[%c1_21, %c0_22, %c0_23] : memref<5x128x128xf32, #tpu.memory_space<vmem>>, vector<1x128x128xf32>
    %17 = vector.shape_cast %16 : vector<1x128x128xf32> to vector<128x128xf32>
    %cst_24 = arith.constant dense<0.000000e+00> : vector<128x128xf32>
    %18 = tpu.matmul %15, %17, %cst_24 {dimension_numbers = #tpu.dot_dimension_numbers<[1], [0], [0], [1], [0, 0, 1, 1], [], []>} : vector<128x128xf32>, vector<128x128xf32>, vector<128x128xf32> -> vector<128x128xf32>
    %19 = arith.addf %13, %18 : vector<128x128xf32>
    %c0_25 = arith.constant 0 : index
    %c2 = arith.constant 2 : index
    %c0_26 = arith.constant 0 : index
    %20 = vector.load %arg8[%c0_25, %c2, %c0_26] : memref<8x20x128xf32, #tpu.memory_space<vmem>>, vector<8x16x128xf32>
    %21 = vector.shape_cast %20 : vector<8x16x128xf32> to vector<128x128xf32>
    %c2_27 = arith.constant 2 : index
    %c0_28 = arith.constant 0 : index
    %c0_29 = arith.constant 0 : index
    %22 = vector.load %arg2[%c2_27, %c0_28, %c0_29] : memref<5x128x128xf32, #tpu.memory_space<vmem>>, vector<1x128x128xf32>
    %23 = vector.shape_cast %22 : vector<1x128x128xf32> to vector<128x128xf32>
    %cst_30 = arith.constant dense<0.000000e+00> : vector<128x128xf32>
    %24 = tpu.matmul %21, %23, %cst_30 {dimension_numbers = #tpu.dot_dimension_numbers<[1], [0], [0], [1], [0, 0, 1, 1], [], []>} : vector<128x128xf32>, vector<128x128xf32>, vector<128x128xf32> -> vector<128x128xf32>
    %25 = arith.addf %19, %24 : vector<128x128xf32>
    %c0_31 = arith.constant 0 : index
    %c3 = arith.constant 3 : index
    %c0_32 = arith.constant 0 : index
    %26 = vector.load %arg8[%c0_31, %c3, %c0_32] : memref<8x20x128xf32, #tpu.memory_space<vmem>>, vector<8x16x128xf32>
    %27 = vector.shape_cast %26 : vector<8x16x128xf32> to vector<128x128xf32>
    %c3_33 = arith.constant 3 : index
    %c0_34 = arith.constant 0 : index
    %c0_35 = arith.constant 0 : index
    %28 = vector.load %arg2[%c3_33, %c0_34, %c0_35] : memref<5x128x128xf32, #tpu.memory_space<vmem>>, vector<1x128x128xf32>
    %29 = vector.shape_cast %28 : vector<1x128x128xf32> to vector<128x128xf32>
    %cst_36 = arith.constant dense<0.000000e+00> : vector<128x128xf32>
    %30 = tpu.matmul %27, %29, %cst_36 {dimension_numbers = #tpu.dot_dimension_numbers<[1], [0], [0], [1], [0, 0, 1, 1], [], []>} : vector<128x128xf32>, vector<128x128xf32>, vector<128x128xf32> -> vector<128x128xf32>
    %31 = arith.addf %25, %30 : vector<128x128xf32>
    %c0_37 = arith.constant 0 : index
    %c4_38 = arith.constant 4 : index
    %c0_39 = arith.constant 0 : index
    %32 = vector.load %arg8[%c0_37, %c4_38, %c0_39] : memref<8x20x128xf32, #tpu.memory_space<vmem>>, vector<8x16x128xf32>
    %33 = vector.shape_cast %32 : vector<8x16x128xf32> to vector<128x128xf32>
    %c4_40 = arith.constant 4 : index
    %c0_41 = arith.constant 0 : index
    %c0_42 = arith.constant 0 : index
    %34 = vector.load %arg2[%c4_40, %c0_41, %c0_42] : memref<5x128x128xf32, #tpu.memory_space<vmem>>, vector<1x128x128xf32>
    %35 = vector.shape_cast %34 : vector<1x128x128xf32> to vector<128x128xf32>
    %cst_43 = arith.constant dense<0.000000e+00> : vector<128x128xf32>
    %36 = tpu.matmul %33, %35, %cst_43 {dimension_numbers = #tpu.dot_dimension_numbers<[1], [0], [0], [1], [0, 0, 1, 1], [], []>} : vector<128x128xf32>, vector<128x128xf32>, vector<128x128xf32> -> vector<128x128xf32>
    %37 = arith.addf %31, %36 : vector<128x128xf32>
    %38 = vector.shape_cast %37 : vector<128x128xf32> to vector<8x16x128xf32>
    %cst_44 = arith.constant dense<0xFF800000> : vector<8x128xf32>
    %39 = vector.multi_reduction <maximumf>, %38, %cst_44 [1] : vector<8x16x128xf32> to vector<8x128xf32>
    %c0_45 = arith.constant 0 : index
    %c0_46 = arith.constant 0 : index
    %40 = vector.load %arg3[%c0_45, %c0_46] : memref<1x128xf32, #tpu.memory_space<vmem>>, vector<1x128xf32>
    %41 = vector.broadcast %40 : vector<1x128xf32> to vector<8x128xf32>
    %42 = arith.addf %39, %41 : vector<8x128xf32>
    %cst_47 = arith.constant 0.000000e+00 : f32
    %43 = vector.broadcast %cst_47 : f32 to vector<8x128xf32>
    %44 = arith.maximumf %42, %43 : vector<8x128xf32>
    %c0_48 = arith.constant 0 : index
    %c0_49 = arith.constant 0 : index
    %45 = vector.load %arg5[%c0_48, %c0_49] : memref<128x128xf32, #tpu.memory_space<vmem>>, vector<128x128xf32>
    %cst_50 = arith.constant dense<0.000000e+00> : vector<8x128xf32>
    %46 = tpu.matmul %44, %45, %cst_50 {dimension_numbers = #tpu.dot_dimension_numbers<[1], [0], [0], [1], [0, 0, 1, 1], [], []>} : vector<8x128xf32>, vector<128x128xf32>, vector<8x128xf32> -> vector<8x128xf32>
    %c0_51 = arith.constant 0 : index
    %c0_52 = arith.constant 0 : index
    %47 = vector.load %arg6[%c0_51, %c0_52] : memref<1x128xf32, #tpu.memory_space<vmem>>, vector<1x128xf32>
    %48 = vector.broadcast %47 : vector<1x128xf32> to vector<8x128xf32>
    %49 = arith.addf %46, %48 : vector<8x128xf32>
    %c0_53 = arith.constant 0 : index
    %c0_54 = arith.constant 0 : index
    %50 = vector.load %arg7[%c0_53, %c0_54] : memref<8x128xf32, #tpu.memory_space<vmem>>, vector<8x128xf32>
    tpu.vector_store %arg7[%c0_53, %c0_54], %49 {strides = array<i32>} : memref<8x128xf32, #tpu.memory_space<vmem>>, vector<8x128xf32>,
    return
  }
  func.func @transform_0(%arg0: i32) -> (i32, i32, i32) {
    %c0_i32 = arith.constant 0 : i32
    %c0_i32_0 = arith.constant 0 : i32
    %c0_i32_1 = arith.constant 0 : i32
    return %arg0, %c0_i32, %c0_i32_0 : i32, i32, i32
  }
  func.func @transform_1(%arg0: i32) -> (i32, i32, i32) {
    %c0_i32 = arith.constant 0 : i32
    %c0_i32_0 = arith.constant 0 : i32
    %c0_i32_1 = arith.constant 0 : i32
    %c0_i32_2 = arith.constant 0 : i32
    return %c0_i32, %c0_i32_0, %c0_i32_1 : i32, i32, i32
  }
  func.func @transform_2(%arg0: i32) -> (i32, i32) {
    %c0_i32 = arith.constant 0 : i32
    %c0_i32_0 = arith.constant 0 : i32
    %c0_i32_1 = arith.constant 0 : i32
    return %c0_i32, %c0_i32_0 : i32, i32
  }
  func.func @transform_3(%arg0: i32) -> (i32, i32) {
    %c0_i32 = arith.constant 0 : i32
    %c0_i32_0 = arith.constant 0 : i32
    %c0_i32_1 = arith.constant 0 : i32
    return %c0_i32, %c0_i32_0 : i32, i32
  }
  func.func @transform_4(%arg0: i32) -> (i32, i32) {
    %c0_i32 = arith.constant 0 : i32
    %c0_i32_0 = arith.constant 0 : i32
    %c0_i32_1 = arith.constant 0 : i32
    return %c0_i32, %c0_i32_0 : i32, i32
  }
  func.func @transform_5(%arg0: i32) -> (i32, i32) {
    %c0_i32 = arith.constant 0 : i32
    %c0_i32_0 = arith.constant 0 : i32
    %c0_i32_1 = arith.constant 0 : i32
    return %c0_i32, %c0_i32_0 : i32, i32
  }
  func.func @transform_6(%arg0: i32) -> (i32, i32) {
    %c0_i32 = arith.constant 0 : i32
    %c0_i32_0 = arith.constant 0 : i32
    return %arg0, %c0_i32 : i32, i32
  }
}

</mosaic_0001>

<bundles_post_ra>
// kernel: tpu_custom_call.1
= control target key start
LH: loop header
LB: loop body
LE: loop exit
PB: predicated region body
PF: predicated region fallthrough
CT: control target
= control target key end

     0   :  { %11 = vsyncpa [#allocation4], 0  ;;  %s2425_s0 = inlined_call_operand.hbm [shape: f32[8,8,128], index: 0, kind: input, shape index: {}]   ;;  %s2426_s1 = inlined_call_operand.hbm [shape: f32[5,128,128], index: 1, kind: input, shape index: {}]   ;;  %s2427_s2 = inlined_call_operand.vmem [shape: f32[1,128], index: 2, kind: input, shape index: {}]   ;;  %s2428_s3 = inlined_call_operand.hbm [shape: f32[16,128], index: 3, kind: input, shape index: {}]   ;;  %s2429_s4 = inlined_call_operand.hbm [shape: f32[128,128], index: 4, kind: input, shape index: {}]   ;;  %s2430_s5 = inlined_call_operand.vmem [shape: f32[1,128], index: 5, kind: input, shape index: {}]   ;;  %s2431_s6 = inlined_call_operand.hbm [shape: f32[8,128], index: 6, kind: output, shape index: {}]  }
   0x1   :  { %12 = vsyncpa [#allocation7], 0 }
   0x2   :  { %13 = vsyncpa [#allocation10], 0 }
   0x3   :  { %14 = vsyncpa [#allocation5], 0  ;;  %s2188_s21 = smov [#allocation6]   ;;  %s2189_s23 = smov [#allocation3]  }
   0x4   :  { %s32_s22 = sshll.u32 %s2188_s21, 4  ;;  %s20_s24 = sshll.u32 %s2189_s23, 4  ;;  %s33_s22 = int_to_ptr.vmem [resolvable:$true] %s32_s22  ;;  %s2233_s24 = int_to_ptr.vmem [resolvable:$true] %s20_s24 }
   0x5   :  { %s2070_s27 = scalar_lea.hbm %s2426_s1, 10240 }
   0x6   :  { %p2071_p0 = scmp.ne.s32.totalorder %s2426_s1, %s2070_s27  ;;  %p2074_p1 = scmp.lt.u32.totalorder %s2070_s27, %s2426_s1 }
   0x8   :  { %p2076_p2 = pnand %p2074_p1, %p2071_p0 }
   0xa   :  { %2079 = shalt.err (!%p2076_p2)
}
   0xb   :  { %s2080_s8 = scalar_lea.vmem %s33_s22, 10240  ;;  %p2085_p4 = scmp.lt.s32.totalorder %s33_s22, %s33_s22 }
   0xc   :  { %p2081_p3 = scmp.ne.s32.totalorder %s33_s22, %s2080_s8  ;;  %p2086_p5 = scmp.lt.s32.totalorder %s2080_s8, %s2080_s8 }
   0xe   :  { %p2087_p6 = por %p2086_p5, %p2085_p4 }
  0x10   :  { %p2088_p7 = pnand %p2087_p6, %p2081_p3 }
  0x12   :  { %2091 = shalt.err (!%p2088_p7)
}
  0x13   :  { %s2190_s9 = smov 128   ;;  %s2191_s10 = smov 8  }
  0x14   :  { %38 = dma.hbm_to_vmem [thread:$0]  %s2426_s1, 10240, %s33_s22, [#allocation7], %s2190_s9, %s2190_s9, %s2191_s10  }
  0x15   :  { %s2092_s15 = scalar_lea.hbm %s2425_s0, 1024 }
  0x16   :  { %p2093_p8 = scmp.ne.s32.totalorder %s2425_s0, %s2092_s15  ;;  %p2096_p9 = scmp.lt.u32.totalorder %s2092_s15, %s2425_s0 }
  0x18   :  { %p2098_p10 = pnand %p2096_p9, %p2093_p8 }
  0x1a   :  { %2101 = shalt.err (!%p2098_p10)
}
  0x1b   :  { %s2102_s20 = scalar_lea.vmem %s2233_s24, 1024  ;;  %p2107_p12 = scmp.lt.s32.totalorder %s2233_s24, %s2233_s24 }
  0x1c   :  { %p2103_p11 = scmp.ne.s32.totalorder %s2233_s24, %s2102_s20  ;;  %p2108_p13 = scmp.lt.s32.totalorder %s2102_s20, %s2102_s20 }
  0x1e   :  { %p2109_p0 = por %p2108_p13, %p2107_p12 }
  0x20   :  { %p2110_p1 = pnand %p2109_p0, %p2103_p11 }
  0x22   :  { %2113 = shalt.err (!%p2110_p1)
}
  0x23   :  { %26 = dma.hbm_to_vmem [thread:$0]  %s2425_s0, 1024, %s2233_s24, [#allocation4], %s2190_s9, %s2190_s9, %s2191_s10  }
  0x24   :  { %s2192_s22 = smov [#allocation8]   ;;  %s2193_s25 = smov [#allocation9]  }
  0x25   :  { %s46_s23 = sshll.u32 %s2192_s22, 4  ;;  %s58_s26 = sshll.u32 %s2193_s25, 4  ;;  %s47_s23 = int_to_ptr.vmem [resolvable:$true] %s46_s23  ;;  %s2270_s26 = int_to_ptr.vmem [resolvable:$true] %s58_s26 }
  0x26   :  { %s2114_s29 = scalar_lea.hbm %s2428_s3, 256 }
  0x27   :  { %p2115_p2 = scmp.ne.s32.totalorder %s2428_s3, %s2114_s29  ;;  %p2118_p3 = scmp.lt.u32.totalorder %s2114_s29, %s2428_s3 }
  0x29   :  { %p2120_p4 = pnand %p2118_p3, %p2115_p2 }
  0x2b   :  { %2123 = shalt.err (!%p2120_p4)
}
  0x2c   :  { %s2124_s0 = scalar_lea.vmem %s47_s23, 256  ;;  %p2129_p6 = scmp.lt.s32.totalorder %s47_s23, %s47_s23 }
  0x2d   :  { %p2125_p5 = scmp.ne.s32.totalorder %s47_s23, %s2124_s0  ;;  %p2130_p7 = scmp.lt.s32.totalorder %s2124_s0, %s2124_s0 }
  0x2f   :  { %p2131_p8 = por %p2130_p7, %p2129_p6 }
  0x31   :  { %p2132_p9 = pnand %p2131_p8, %p2125_p5 }
  0x33   :  { %2135 = shalt.err (!%p2132_p9)
}
  0x34   :  { %52 = dma.hbm_to_vmem [thread:$0]  %s2428_s3, 256, %s47_s23, [#allocation7], %s2190_s9, %s2190_s9, %s2191_s10  }
  0x35   :  { %s2136_s15 = scalar_lea.hbm %s2429_s4, 2048 }
  0x36   :  { %p2137_p10 = scmp.ne.s32.totalorder %s2429_s4, %s2136_s15  ;;  %p2140_p11 = scmp.lt.u32.totalorder %s2136_s15, %s2429_s4 }
  0x38   :  { %p2142_p12 = pnand %p2140_p11, %p2137_p10 }
  0x3a   :  { %2145 = shalt.err (!%p2142_p12)
}
  0x3b   :  { %s2146_s20 = scalar_lea.vmem %s2270_s26, 2048  ;;  %p2151_p0 = scmp.lt.s32.totalorder %s2270_s26, %s2270_s26 }
  0x3c   :  { %p2147_p13 = scmp.ne.s32.totalorder %s2270_s26, %s2146_s20  ;;  %p2152_p1 = scmp.lt.s32.totalorder %s2146_s20, %s2146_s20 }
  0x3e   :  { %p2153_p2 = por %p2152_p1, %p2151_p0 }
  0x40   :  { %p2154_p3 = pnand %p2153_p2, %p2147_p13 }
  0x42   :  { %2157 = shalt.err (!%p2154_p3)
}
  0x43   :  { %64 = dma.hbm_to_vmem [thread:$0]  %s2429_s4, 2048, %s2270_s26, [#allocation10], %s2190_s9, %s2190_s9, %s2191_s10  }
  0x44   :  { %2180 = dma.done.wait [#allocation4], 1024  }
  0x45   :  { %2181 = vsyncadd [#allocation4], 4294966272 }
  0x46   :  { %2182 = dma.done.wait [#allocation7], 10496  }
  0x47   :  { %2183 = vsyncadd [#allocation7], 4294956800 }
  0x48   :  { %2184 = dma.done.wait [#allocation10], 2048  }
  0x49   :  { %2185 = vsyncadd [#allocation10], 4294965248  ;;  %v2194_v0 = vmov 0.0   ;;  %v129_v1 = vld [vmem:[#allocation6] sm:$0xff]  ;;  %v130_v2 = vld [vmem:[#allocation6 + $0x8] sm:$0xff]  ;;  %vm2196_vm0 = vmmov 0  }
  0x4a   :  { %87 = vst [vmem:[#allocation2] sm:$0xf] %v2194_v0  ;;  %88 = vst [vmem:[#allocation2 + $0x18] sm:$0xf] %v2194_v0  ;;  %v517_v3 = vld [vmem:[#allocation6 + $0x100] sm:$0xff]  ;;  %v1796_v4 = vpack.c.bf16 %v130_v2, %v129_v1  ;;  %v518_v5 = vld [vmem:[#allocation6 + $0x108] sm:$0xff] }
  0x4b   :  { %89 = vst [vmem:[#allocation2 + $0x30] sm:$0xf] %v2194_v0  ;;  %90 = vst [vmem:[#allocation2 + $0x48] sm:$0xf] %v2194_v0  ;;  %v131_v6 = vld [vmem:[#allocation6 + $0x10] sm:$0xff]  ;;  %v132_v7 = vld [vmem:[#allocation6 + $0x18] sm:$0xff]  ;;  %v1860_v8 = vpack.c.bf16 %v518_v5, %v517_v3 }
  0x4c   :  { %91 = vst [vmem:[#allocation2 + $0x60] sm:$0xf] %v2194_v0  ;;  %92 = vst [vmem:[#allocation2 + $0x78] sm:$0xf] %v2194_v0  ;;  %v1800_v9 = vpack.c.bf16 %v132_v7, %v131_v6  ;;  %v519_v10 = vld [vmem:[#allocation6 + $0x110] sm:$0xff]  ;;  %v520_v11 = vld [vmem:[#allocation6 + $0x118] sm:$0xff]  ;;  %1797 = vmatprep.subr.bf16.mxu1 %v1796_v4 }
  0x4d   :  { %93 = vst [vmem:[#allocation2 + $0x90] sm:$0xf] %v2194_v0  ;;  %94 = vst [vmem:[#allocation2 + $0xa8] sm:$0xf] %v2194_v0  ;;  %v133_v12 = vld [vmem:[#allocation6 + $0x20] sm:$0xff]  ;;  %v1864_v13 = vpack.c.bf16 %v520_v11, %v519_v10  ;;  %v134_v14 = vld [vmem:[#allocation6 + $0x28] sm:$0xff]  ;;  %1861 = vmatprep.subr.bf16.mxu0 %v1860_v8  ;;  %1799 = vmatpush3.bf16.msra.mxu1 %v1796_v4 }
  0x4e   :  { %95 = vst [vmem:[#allocation2 + $0xc] sm:$0xff] %v2194_v0  ;;  %96 = vst [vmem:[#allocation2 + $0x24] sm:$0xff] %v2194_v0  ;;  %v521_v15 = vld [vmem:[#allocation6 + $0x120] sm:$0xff]  ;;  %v522_v16 = vld [vmem:[#allocation6 + $0x128] sm:$0xff]  ;;  %1863 = vmatpush3.bf16.msra.mxu0 %v1860_v8  ;;  %1801 = vmatprep.subr.bf16.mxu1 %v1800_v9  ;;  %v1804_v17 = vpack.c.bf16 %v134_v14, %v133_v12  ;;  %vm1193_vm1 = vcmask 1041409   ;;  %vm1196_vm2 = vcmask 1042434  }
  0x4f   :  { %97 = vst [vmem:[#allocation2 + $0x3c] sm:$0xff] %v2194_v0  ;;  %98 = vst [vmem:[#allocation2 + $0x54] sm:$0xff] %v2194_v0  ;;  %1865 = vmatprep.subr.bf16.mxu0 %v1864_v13  ;;  %v1868_v18 = vpack.c.bf16 %v522_v16, %v521_v15  ;;  %v135_v19 = vld [vmem:[#allocation6 + $0x30] sm:$0xff]  ;;  %v136_v20 = vld [vmem:[#allocation6 + $0x38] sm:$0xff]  ;;  %vm1199_vm3 = vcmask 1043459   ;;  %vm1202_vm4 = vcmask 1044484  }
  0x50   :  { %99 = vst [vmem:[#allocation2 + $0x6c] sm:$0xff] %v2194_v0  ;;  %100 = vst [vmem:[#allocation2 + $0x84] sm:$0xff] %v2194_v0  ;;  %v523_v21 = vld [vmem:[#allocation6 + $0x130] sm:$0xff]  ;;  %v524_v22 = vld [vmem:[#allocation6 + $0x138] sm:$0xff]  ;;  %v1808_v23 = vpack.c.bf16 %v136_v20, %v135_v19  ;;  %vm1205_vm5 = vcmask 1045509   ;;  %vm1208_vm6 = vcmask 1046534  }
  0x51   :  { %101 = vst [vmem:[#allocation2 + $0x9c] sm:$0xff] %v2194_v0  ;;  %102 = vst [vmem:[#allocation2 + $0xb4] sm:$0xff] %v2194_v0  ;;  %1803 = vmatpush3.bf16.msra.mxu1 %v1800_v9  ;;  %v1872_v24 = vpack.c.bf16 %v524_v22, %v523_v21  ;;  %v137_v25 = vld [vmem:[#allocation6 + $0x40] sm:$0xff]  ;;  %v138_v26 = vld [vmem:[#allocation6 + $0x48] sm:$0xff]  ;;  %vm1211_vm7 = vcmask 1047559   ;;  %s2197_s21 = smov [#allocation11]  }
  0x52   :  { %1867 = vmatpush3.bf16.msra.mxu0 %v1864_v13  ;;  %1805 = vmatprep.subr.bf16.mxu1 %v1804_v17  ;;  %v2323_v27 = vld [vmem:[#allocation3] sm:$0xff]  ;;  %v526_v29 = vld [vmem:[#allocation6 + $0x148] sm:$0xff]  ;;  %v1812_v31 = vpack.c.bf16 %v138_v26, %v137_v25  ;;  %v139_v33 = vld [vmem:[#allocation6 + $0x50] sm:$0xff]  ;;  %s1291_s22 = sshll.u32 %s2197_s21, 4  ;;  %s1292_s22 = int_to_ptr.vmem [resolvable:$true] %s1291_s22 }
  0x53   :  { %1869 = vmatprep.subr.bf16.mxu0 %v1868_v18  ;;  %v525_v28 = vld [vmem:[#allocation6 + $0x140] sm:$0xff]  ;;  %103 = vst [vmem:[#allocation2 + $0x4] sm:$0xff] %v2323_v27  ;;  %v2326_v30 = vld [vmem:[#allocation3 + $0x8] sm:$0xff]  ;;  %v140_v34 = vld [vmem:[#allocation6 + $0x58] sm:$0xff]  ;;  %s2158_s23 = scalar_lea.vmem %s1292_s22, 128  ;;  %p2163_p5 = scmp.lt.s32.totalorder %s1292_s22, %s1292_s22 }
  0x54   :  { %104 = vst [vmem:[#allocation2 + $0x1c] sm:$0xff] %v2326_v30  ;;  %v1876_v32 = vpack.c.bf16 %v526_v29, %v525_v28  ;;  %v2329_v35 = vld [vmem:[#allocation3 + $0x10] sm:$0xff]  ;;  %v528_v37 = vld [vmem:[#allocation6 + $0x158] sm:$0xff]  ;;  %v1816_v39 = vpack.c.bf16 %v140_v34, %v139_v33  ;;  %v141_v40 = vld [vmem:[#allocation6 + $0x60] sm:$0xff]  ;;  %p2159_p4 = scmp.ne.s32.totalorder %s1292_s22, %s2158_s23  ;;  %p2164_p6 = scmp.lt.s32.totalorder %s2158_s23, %s2158_s23 }
  0x55   :  { %1807 = vmatpush3.bf16.msra.mxu1 %v1804_v17  ;;  %v527_v36 = vld [vmem:[#allocation6 + $0x150] sm:$0xff]  ;;  %105 = vst [vmem:[#allocation2 + $0x34] sm:$0xff] %v2329_v35  ;;  %v2332_v38 = vld [vmem:[#allocation3 + $0x18] sm:$0xff]  ;;  %v2335_v41 = vld [vmem:[#allocation3 + $0x20] sm:$0xff] }
  0x56   :  { %1871 = vmatpush3.bf16.msra.mxu0 %v1868_v18  ;;  %1809 = vmatprep.subr.bf16.mxu1 %v1808_v23  ;;  %106 = vst [vmem:[#allocation2 + $0x4c] sm:$0xff] %v2332_v38  ;;  %v1880_v42 = vpack.c.bf16 %v528_v37, %v527_v36  ;;  %v142_v43 = vld [vmem:[#allocation6 + $0x68] sm:$0xff]  ;;  %107 = vst [vmem:[#allocation2 + $0x64] sm:$0xff] %v2335_v41  ;;  %v529_v46 = vld [vmem:[#allocation6 + $0x160] sm:$0xff]  ;;  %p2165_p7 = por %p2164_p6, %p2163_p5 }
  0x57   :  { %1873 = vmatprep.subr.bf16.mxu0 %v1872_v24  ;;  %v530_v47 = vld [vmem:[#allocation6 + $0x168] sm:$0xff]  ;;  %v1820_v48 = vpack.c.bf16 %v142_v43, %v141_v40  ;;  %v143_v51 = vld [vmem:[#allocation6 + $0x70] sm:$0xff]  ;;  %v144_v52 = vld [vmem:[#allocation6 + $0x78] sm:$0xff] }
  0x58   :  { %v2338_v49 = vld [vmem:[#allocation3 + $0x28] sm:$0xff]  ;;  %v1884_v50 = vpack.c.bf16 %v530_v47, %v529_v46  ;;  %v531_v53 = vld [vmem:[#allocation6 + $0x170] sm:$0xff]  ;;  %v532_v54 = vld [vmem:[#allocation6 + $0x178] sm:$0xff]  ;;  %v1824_v55 = vpack.c.bf16 %v144_v52, %v143_v51  ;;  %p2166_p8 = pnand %p2165_p7, %p2159_p4 }
  0x59   :  { %1811 = vmatpush3.bf16.msra.mxu1 %v1808_v23  ;;  %108 = vst [vmem:[#allocation2 + $0x7c] sm:$0xff] %v2338_v49  ;;  %v1888_v56 = vpack.c.bf16 %v532_v54, %v531_v53  ;;  %v323_v57 = vld [vmem:[#allocation6 + $0x80] sm:$0xff]  ;;  %v324_v58 = vld [vmem:[#allocation6 + $0x88] sm:$0xff]  ;;  %v2341_v61 = vld [vmem:[#allocation3 + $0x30] sm:$0xff] }
  0x5a   :  { %1875 = vmatpush3.bf16.msra.mxu0 %v1872_v24  ;;  %1813 = vmatprep.subr.bf16.mxu1 %v1812_v31  ;;  %v113_v44 = vld [vmem:[#allocation2] sm:$0xff]  ;;  %v712_v60 = vld [vmem:[#allocation6 + $0x188] sm:$0xff]  ;;  %109 = vst [vmem:[#allocation2 + $0x94] sm:$0xff] %v2341_v61  ;;  %v1828_v62 = vpack.c.bf16 %v324_v58, %v323_v57  ;;  %v2344_v1 = vld [vmem:[#allocation3 + $0x38] sm:$0xff] }
  0x5b   :  { %1877 = vmatprep.subr.bf16.mxu0 %v1876_v32  ;;  %v500_v45 = vld [vmem:[#allocation2 + $0x2] sm:$0xff]  ;;  %1513 = vmatprep.mubr.f32.mxu1 %v113_v44  ;;  %v325_v2 = vld [vmem:[#allocation6 + $0x90] sm:$0xff]  ;;  %v326_v3 = vld [vmem:[#allocation6 + $0x98] sm:$0xff]  ;;  %110 = vst [vmem:[#allocation2 + $0xac] sm:$0xff] %v2344_v1 }
  0x5c   :  { %1625 = vmatprep.mubr.f32.mxu0 %v500_v45  ;;  %v711_v59 = vld [vmem:[#allocation6 + $0x180] sm:$0xff]  ;;  %v114_v4 = vld [vmem:[#allocation2 + $0x8] sm:$0xff]  ;;  %v713_v5 = vld [vmem:[#allocation6 + $0x190] sm:$0xff]  ;;  %v1832_v9 = vpack.c.bf16 %v326_v3, %v325_v2 }
  0x5d   :  { %1815 = vmatpush3.bf16.msra.mxu1 %v1812_v31  ;;  %v1892_v63 = vpack.c.bf16 %v712_v60, %v711_v59  ;;  %v714_v6 = vld [vmem:[#allocation6 + $0x198] sm:$0xff]  ;;  %v501_v7 = vld [vmem:[#allocation2 + $0xa] sm:$0xff]  ;;  %v327_v12 = vld [vmem:[#allocation6 + $0xa0] sm:$0xff] }
  0x5e   :  { %1879 = vmatpush3.bf16.msra.mxu0 %v1876_v32  ;;  %1817 = vmatprep.subr.bf16.mxu1 %v1816_v39  ;;  %v115_v8 = vld [vmem:[#allocation2 + $0x18] sm:$0xff]  ;;  %v1896_v11 = vpack.c.bf16 %v714_v6, %v713_v5  ;;  %v328_v13 = vld [vmem:[#allocation6 + $0xa8] sm:$0xff]  ;;  %v116_v14 = vld [vmem:[#allocation2 + $0x20] sm:$0xff] }
  0x5f   :  { %1881 = vmatprep.subr.bf16.mxu0 %v1880_v42  ;;  %v502_v10 = vld [vmem:[#allocation2 + $0x1a] sm:$0xff]  ;;  %v716_v16 = vld [vmem:[#allocation6 + $0x1a8] sm:$0xff]  ;;  %v117_v18 = vld [vmem:[#allocation2 + $0x30] sm:$0xff]  ;;  %v1836_v19 = vpack.c.bf16 %v328_v13, %v327_v12 }
  0x60   :  { %v715_v15 = vld [vmem:[#allocation6 + $0x1a0] sm:$0xff]  ;;  %v504_v20 = vld [vmem:[#allocation2 + $0x32] sm:$0xff]  ;;  %v119_v29 = vld [vmem:[#allocation2 + $0x48] sm:$0xff] }
  0x61   :  { %1819 = vmatpush3.bf16.msra.mxu1 %v1816_v39  ;;  %v503_v17 = vld [vmem:[#allocation2 + $0x22] sm:$0xff]  ;;  %v1900_v21 = vpack.c.bf16 %v716_v16, %v715_v15  ;;  %v329_v22 = vld [vmem:[#allocation6 + $0xb0] sm:$0xff]  ;;  %v330_v23 = vld [vmem:[#allocation6 + $0xb8] sm:$0xff] }
  0x62   :  { %1883 = vmatpush3.bf16.msra.mxu0 %v1880_v42  ;;  %1821 = vmatprep.subr.bf16.mxu1 %v1820_v48  ;;  %v118_v24 = vld [vmem:[#allocation2 + $0x38] sm:$0xff]  ;;  %v717_v25 = vld [vmem:[#allocation6 + $0x1b0] sm:$0xff]  ;;  %v1840_v31 = vpack.c.bf16 %v330_v23, %v329_v22  ;;  %v331_v34 = vld [vmem:[#allocation6 + $0xc0] sm:$0xff] }
  0x63   :  { %1885 = vmatprep.subr.bf16.mxu0 %v1884_v50  ;;  %v718_v26 = vld [vmem:[#allocation6 + $0x1b8] sm:$0xff]  ;;  %v506_v32 = vld [vmem:[#allocation2 + $0x4a] sm:$0xff]  ;;  %v719_v39 = vld [vmem:[#allocation6 + $0x1c0] sm:$0xff] }
  0x64   :  { %v505_v28 = vld [vmem:[#allocation2 + $0x3a] sm:$0xff]  ;;  %v1904_v33 = vpack.c.bf16 %v718_v26, %v717_v25  ;;  %v332_v36 = vld [vmem:[#allocation6 + $0xc8] sm:$0xff]  ;;  %v120_v37 = vld [vmem:[#allocation2 + $0x50] sm:$0xff] }
  0x65   :  { %1823 = vmatpush3.bf16.msra.mxu1 %v1820_v48  ;;  %v720_v40 = vld [vmem:[#allocation6 + $0x1c8] sm:$0xff]  ;;  %v507_v42 = vld [vmem:[#allocation2 + $0x52] sm:$0xff]  ;;  %v121_v43 = vld [vmem:[#allocation2 + $0x60] sm:$0xff]  ;;  %v1844_v44 = vpack.c.bf16 %v332_v36, %v331_v34 }
  0x66   :  { %1887 = vmatpush3.bf16.msra.mxu0 %v1884_v50  ;;  %1825 = vmatprep.subr.bf16.mxu1 %v1824_v55  ;;  %v508_v45 = vld [vmem:[#allocation2 + $0x62] sm:$0xff]  ;;  %v1908_v46 = vpack.c.bf16 %v720_v40, %v719_v39  ;;  %v333_v47 = vld [vmem:[#allocation6 + $0xd0] sm:$0xff]  ;;  %v334_v48 = vld [vmem:[#allocation6 + $0xd8] sm:$0xff] }
  0x67   :  { %1889 = vmatprep.subr.bf16.mxu0 %v1888_v56  ;;  %v122_v50 = vld [vmem:[#allocation2 + $0x68] sm:$0xff]  ;;  %v721_v51 = vld [vmem:[#allocation6 + $0x1d0] sm:$0xff]  ;;  %v722_v52 = vld [vmem:[#allocation6 + $0x1d8] sm:$0xff] }
  0x68   :  { %v509_v53 = vld [vmem:[#allocation2 + $0x6a] sm:$0xff]  ;;  %v123_v54 = vld [vmem:[#allocation2 + $0x78] sm:$0xff]  ;;  %v1912_v57 = vpack.c.bf16 %v722_v52, %v721_v51  ;;  %v335_v58 = vld [vmem:[#allocation6 + $0xe0] sm:$0xff] }
  0x69   :  { %1827 = vmatpush3.bf16.msra.mxu1 %v1824_v55  ;;  %v1848_v55 = vpack.c.bf16 %v334_v48, %v333_v47  ;;  %v336_v59 = vld [vmem:[#allocation6 + $0xe8] sm:$0xff]  ;;  %v124_v60 = vld [vmem:[#allocation2 + $0x80] sm:$0xff]  ;;  %v125_v3 = vld [vmem:[#allocation2 + $0x90] sm:$0xff] }
  0x6a   :  { %1891 = vmatpush3.bf16.msra.mxu0 %v1888_v56  ;;  %1829 = vmatprep.subr.bf16.mxu1 %v1828_v62  ;;  %v510_v56 = vld [vmem:[#allocation2 + $0x7a] sm:$0xff]  ;;  %v511_v2 = vld [vmem:[#allocation2 + $0x82] sm:$0xff]  ;;  %v512_v5 = vld [vmem:[#allocation2 + $0x92] sm:$0xff] }
  0x6b   :  { %1893 = vmatprep.subr.bf16.mxu0 %v1892_v63  ;;  %v513_v12 = vld [vmem:[#allocation2 + $0x9a] sm:$0xff]  ;;  %v127_v13 = vld [vmem:[#allocation2 + $0xa8] sm:$0xff]  ;;  %v310_v39 = vld [vmem:[#allocation2 + $0x31] sm:$0xff] }
  0x6c   :  { %1514 = vmatmul.mubr.f32.vlgmr.msra.gmra.mrb[0].mxu1 %v114_v4  ;;  %v1852_v4 = vpack.c.bf16 %v336_v59, %v335_v58  ;;  %v514_v15 = vld [vmem:[#allocation2 + $0xaa] sm:$0xff]  ;;  %v908_v25 = vld [vmem:[#allocation6 + $0x218] sm:$0xff]  ;;  %v309_v36 = vld [vmem:[#allocation2 + $0x21] sm:$0xff] }
  0x6d   :  { %1626 = vmatmul.mubr.f32.vlgmr.msra.gmra.mrb[0].mxu0 %v501_v7  ;;  %1831 = vmatpush3.bf16.msra.mxu1 %v1828_v62  ;;  %v723_v62 = vld [vmem:[#allocation6 + $0x1e0] sm:$0xff]  ;;  %v337_v7 = vld [vmem:[#allocation6 + $0xf0] sm:$0xff]  ;;  %v910_v34 = vld [vmem:[#allocation6 + $0x228] sm:$0xff] }
  0x6e   :  { %1895 = vmatpush3.bf16.msra.mxu0 %v1892_v63  ;;  %1516 = vmatprep.mubr.f32.mxu1 %v115_v8  ;;  %v724_v63 = vld [vmem:[#allocation6 + $0x1e8] sm:$0xff]  ;;  %v338_v8 = vld [vmem:[#allocation6 + $0xf8] sm:$0xff]  ;;  %v913_v51 = vld [vmem:[#allocation6 + $0x240] sm:$0xff] }
  0x6f   :  { %1628 = vmatprep.mubr.f32.mxu0 %v502_v10  ;;  %1833 = vmatprep.subr.bf16.mxu1 %v1832_v9  ;;  %v1916_v6 = vpack.c.bf16 %v724_v63, %v723_v62  ;;  %v725_v10 = vld [vmem:[#allocation6 + $0x1f0] sm:$0xff]  ;;  %v694_v23 = vld [vmem:[#allocation2 + $0x3] sm:$0xff]  ;;  %v916_v59 = vld [vmem:[#allocation6 + $0x258] sm:$0xff] }
  0x70   :  { %1517 = vmatmul.mubr.f32.gmra.mrb[2].mxu1 %v116_v14  ;;  %1897 = vmatprep.subr.bf16.mxu0 %v1896_v11  ;;  %v1856_v14 = vpack.c.bf16 %v338_v8, %v337_v7  ;;  %v307_v26 = vld [vmem:[#allocation2 + $0x9] sm:$0xff]  ;;  %v698_v40 = vld [vmem:[#allocation2 + $0x33] sm:$0xff] }
  0x71   :  { %1629 = vmatmul.mubr.f32.gmra.mrb[2].mxu0 %v503_v17  ;;  %1835 = vmatpush3.bf16.msra.mxu1 %v1832_v9  ;;  %v126_v9 = vld [vmem:[#allocation2 + $0x98] sm:$0xff]  ;;  %v905_v17 = vld [vmem:[#allocation6 + $0x200] sm:$0xff]  ;;  %v312_v47 = vld [vmem:[#allocation2 + $0x49] sm:$0xff] }
  0x72   :  { %1899 = vmatpush3.bf16.msra.mxu0 %v1896_v11  ;;  %1519 = vmatprep.mubr.f32.mxu1 %v117_v18  ;;  %v726_v11 = vld [vmem:[#allocation6 + $0x1f8] sm:$0xff]  ;;  %v906_v18 = vld [vmem:[#allocation6 + $0x208] sm:$0xff]  ;;  %v915_v58 = vld [vmem:[#allocation6 + $0x250] sm:$0xff] }
  0x73   :  { %1631 = vmatprep.mubr.f32.mxu0 %v504_v20  ;;  %1837 = vmatprep.subr.bf16.mxu1 %v1836_v19  ;;  %v1920_v16 = vpack.c.bf16 %v726_v11, %v725_v10  ;;  %v515_v20 = vld [vmem:[#allocation2 + $0xb2] sm:$0xff]  ;;  %v1924_v22 = vpack.c.bf16 %v906_v18, %v905_v17  ;;  %v914_v52 = vld [vmem:[#allocation6 + $0x248] sm:$0xff] }
  0x74   :  { %1520 = vmatmul.mubr.f32.gmra.mrb[4].mxu1 %v118_v24  ;;  %1901 = vmatprep.subr.bf16.mxu0 %v1900_v21  ;;  %v907_v24 = vld [vmem:[#allocation6 + $0x210] sm:$0xff]  ;;  %v316_v63 = vld [vmem:[#allocation2 + $0x79] sm:$0xff]  ;;  %v705_v7 = vld [vmem:[#allocation2 + $0x83] sm:$0xff] }
  0x75   :  { %1632 = vmatmul.mubr.f32.gmra.mrb[4].mxu0 %v505_v28  ;;  %1839 = vmatpush3.bf16.msra.mxu1 %v1836_v19  ;;  %v128_v19 = vld [vmem:[#allocation2 + $0xb0] sm:$0xff] }
  0x76   :  { %1903 = vmatpush3.bf16.msra.mxu0 %v1900_v21  ;;  %1522 = vmatprep.mubr.f32.mxu1 %v119_v29  ;;  %v306_v21 = vld [vmem:[#allocation2 + $0x1] sm:$0xff]  ;;  %v695_v28 = vld [vmem:[#allocation2 + $0xb] sm:$0xff]  ;;  %v308_v29 = vld [vmem:[#allocation2 + $0x19] sm:$0xff] }
  0x77   :  { %1634 = vmatprep.mubr.f32.mxu0 %v506_v32  ;;  %1841 = vmatprep.subr.bf16.mxu1 %v1840_v31  ;;  %v1928_v32 = vpack.c.bf16 %v908_v25, %v907_v24  ;;  %v700_v48 = vld [vmem:[#allocation2 + $0x4b] sm:$0xff] }
  0x78   :  { %1523 = vmatmul.mubr.f32.gmra.mrb[6].mxu1 %v120_v37  ;;  %1905 = vmatprep.subr.bf16.mxu0 %v1904_v33  ;;  %v697_v37 = vld [vmem:[#allocation2 + $0x23] sm:$0xff]  ;;  %v703_v62 = vld [vmem:[#allocation2 + $0x6b] sm:$0xff] }
  0x79   :  { %1635 = vmatmul.mubr.f32.gmra.mrb[6].mxu0 %v507_v42  ;;  %1843 = vmatpush3.bf16.msra.mxu1 %v1840_v31  ;;  %v696_v31 = vld [vmem:[#allocation2 + $0x1b] sm:$0xff]  ;;  %v318_v8 = vld [vmem:[#allocation2 + $0x91] sm:$0xff] }
  0x7a   :  { %1907 = vmatpush3.bf16.msra.mxu0 %v1904_v33  ;;  %1525 = vmatprep.mubr.f32.mxu1 %v121_v43  ;;  %v909_v33 = vld [vmem:[#allocation6 + $0x220] sm:$0xff]  ;;  %v911_v43 = vld [vmem:[#allocation6 + $0x230] sm:$0xff] }
  0x7b   :  { %1637 = vmatprep.mubr.f32.mxu0 %v508_v45  ;;  %1845 = vmatprep.subr.bf16.mxu1 %v1844_v44  ;;  %v1932_v42 = vpack.c.bf16 %v910_v34, %v909_v33  ;;  %v311_v45 = vld [vmem:[#allocation2 + $0x39] sm:$0xff]  ;;  %v919_v11 = vld [vmem:[#allocation6 + $0x270] sm:$0xff] }
  0x7c   :  { %1526 = vmatmul.mubr.f32.gmra.mrb[8].mxu1 %v122_v50  ;;  %1909 = vmatprep.subr.bf16.mxu0 %v1908_v46  ;;  %v321_v18 = vld [vmem:[#allocation2 + $0xb1] sm:$0xff] }
  0x7d   :  { %1638 = vmatmul.mubr.f32.gmra.mrb[8].mxu0 %v509_v53  ;;  %1847 = vmatpush3.bf16.msra.mxu1 %v1844_v44  ;;  %v912_v44 = vld [vmem:[#allocation6 + $0x238] sm:$0xff]  ;;  %v1169_v25 = vld [vmem:[#allocation9 + $0x40] sm:$0xff] }
  0x7e   :  { %1911 = vmatpush3.bf16.msra.mxu0 %v1908_v46  ;;  %1528 = vmatprep.mubr.f32.mxu1 %v123_v54  ;;  %v699_v46 = vld [vmem:[#allocation2 + $0x3b] sm:$0xff]  ;;  %v1936_v50 = vpack.c.bf16 %v912_v44, %v911_v43  ;;  %v313_v53 = vld [vmem:[#allocation2 + $0x51] sm:$0xff] }
  0x7f   :  { %1640 = vmatprep.mubr.f32.mxu0 %v510_v56  ;;  %1849 = vmatprep.subr.bf16.mxu1 %v1848_v55  ;;  %v701_v54 = vld [vmem:[#allocation2 + $0x53] sm:$0xff]  ;;  %v702_v56 = vld [vmem:[#allocation2 + $0x63] sm:$0xff] }
  0x80   :  { %1529 = vmatmul.mubr.f32.gmra.mrb[10].mxu1 %v124_v60  ;;  %1913 = vmatprep.subr.bf16.mxu0 %v1912_v57  ;;  %v315_v60 = vld [vmem:[#allocation2 + $0x69] sm:$0xff]  ;;  %v1174_v34 = vld [vmem:[#allocation9 + $0x68] sm:$0xff] }
  0x81   :  { %1641 = vmatmul.mubr.f32.gmra.mrb[10].mxu0 %v511_v2  ;;  %1851 = vmatpush3.bf16.msra.mxu1 %v1848_v55  ;;  %v314_v55 = vld [vmem:[#allocation2 + $0x61] sm:$0xff]  ;;  %v1173_v33 = vld [vmem:[#allocation9 + $0x60] sm:$0xff] }
  0x82   :  { %1915 = vmatpush3.bf16.msra.mxu0 %v1912_v57  ;;  %1531 = vmatprep.mubr.f32.mxu1 %v125_v3  ;;  %v1940_v57 = vpack.c.bf16 %v914_v52, %v913_v51  ;;  %v704_v2 = vld [vmem:[#allocation2 + $0x7b] sm:$0xff]  ;;  %v1944_v3 = vpack.c.bf16 %v916_v59, %v915_v58 }
  0x83   :  { %1643 = vmatprep.mubr.f32.mxu0 %v512_v5  ;;  %1853 = vmatprep.subr.bf16.mxu1 %v1852_v4  ;;  %v918_v5 = vld [vmem:[#allocation6 + $0x268] sm:$0xff]  ;;  %v2374_v59 = vld [vmem:[#allocation8] sm:$0xff] }
  0x84   :  { %1532 = vmatmul.mubr.f32.gmra.mrb[12].mxu1 %v126_v9  ;;  %1917 = vmatprep.subr.bf16.mxu0 %v1916_v6  ;;  %v706_v9 = vld [vmem:[#allocation2 + $0x93] sm:$0xff] }
  0x85   :  { %1644 = vmatmul.mubr.f32.gmra.mrb[12].mxu0 %v513_v12  ;;  %1855 = vmatpush3.bf16.msra.mxu1 %v1852_v4  ;;  %v917_v4 = vld [vmem:[#allocation6 + $0x260] sm:$0xff]  ;;  %v920_v12 = vld [vmem:[#allocation6 + $0x278] sm:$0xff] }
  0x86   :  { %1919 = vmatpush3.bf16.msra.mxu0 %v1916_v6  ;;  %1534 = vmatprep.mubr.f32.mxu1 %v127_v13  ;;  %v317_v6 = vld [vmem:[#allocation2 + $0x81] sm:$0xff]  ;;  %v1948_v10 = vpack.c.bf16 %v918_v5, %v917_v4  ;;  %v319_v13 = vld [vmem:[#allocation2 + $0x99] sm:$0xff]  ;;  %v1952_v17 = vpack.c.bf16 %v920_v12, %v919_v11 }
  0x87   :  { %1646 = vmatprep.mubr.f32.mxu0 %v514_v15  ;;  %1857 = vmatprep.subr.bf16.mxu1 %v1856_v14  ;;  %v320_v15 = vld [vmem:[#allocation2 + $0xa9] sm:$0xff] }
  0x88   :  { %1535 = vmatmul.mubr.f32.gmra.mrb[14].mxu1 %v128_v19  ;;  %1921 = vmatprep.subr.bf16.mxu0 %v1920_v16  ;;  %v709_v19 = vld [vmem:[#allocation2 + $0xb3] sm:$0xff] }
  0x89   :  { %1647 = vmatmul.mubr.f32.gmra.mrb[14].mxu0 %v515_v20  ;;  %1859 = vmatpush3.bf16.msra.mxu1 %v1856_v14  ;;  %v707_v14 = vld [vmem:[#allocation2 + $0x9b] sm:$0xff]  ;;  %v1164_v20 = vld [vmem:[#allocation9 + $0x18] sm:$0xff] }
  0x8a   :  { %1923 = vmatpush3.bf16.msra.mxu0 %v1920_v16  ;;  %1569 = vmatprep.mubr.f32.mxu1 %v306_v21  ;;  %v708_v16 = vld [vmem:[#allocation2 + $0xab] sm:$0xff] }
  0x8b   :  { %1681 = vmatprep.mubr.f32.mxu0 %v694_v23  ;;  %1925 = vmatprep.subr.bf16.mxu0 %v1924_v22  ;;  %v1165_v21 = vld [vmem:[#allocation9 + $0x20] sm:$0xff]  ;;  %v1168_v23 = vld [vmem:[#allocation9 + $0x38] sm:$0xff] }
  0x8c   :  { %1570 = vmatmul.mubr.f32.vlgmr.msra.gmra.mrb[0].mxu1 %v307_v26  ;;  %v1170_v26 = vld [vmem:[#allocation9 + $0x48] sm:$0xff] }
  0x8d   :  { %1682 = vmatmul.mubr.f32.vlgmr.msra.gmra.mrb[0].mxu0 %v695_v28  ;;  %1572 = vmatprep.mubr.f32.mxu1 %v308_v29  ;;  %v1969_v28 = vpack.c.bf16 %v1170_v26, %v1169_v25  ;;  %v1171_v29 = vld [vmem:[#allocation9 + $0x50] sm:$0xff] }
  0x8e   :  { %1927 = vmatpush3.bf16.msra.mxu0 %v1924_v22  ;;  %1684 = vmatprep.mubr.f32.mxu0 %v696_v31  ;;  %v1172_v31 = vld [vmem:[#allocation9 + $0x58] sm:$0xff] }
  0x8f   :  { %1929 = vmatprep.subr.bf16.mxu0 %v1928_v32 }
  0x90   :  { %1573 = vmatmul.mubr.f32.gmra.mrb[2].mxu1 %v309_v36  ;;  %v1975_v36 = vpack.c.bf16 %v1174_v34, %v1173_v33 }
  0x91   :  { %1685 = vmatmul.mubr.f32.gmra.mrb[2].mxu0 %v697_v37  ;;  %1575 = vmatprep.mubr.f32.mxu1 %v310_v39  ;;  %v1175_v37 = vld [vmem:[#allocation9 + $0x70] sm:$0xff]  ;;  %v1176_v39 = vld [vmem:[#allocation9 + $0x78] sm:$0xff] }
  0x92   :  { %1931 = vmatpush3.bf16.msra.mxu0 %v1928_v32  ;;  %1687 = vmatprep.mubr.f32.mxu0 %v698_v40  ;;  %v1972_v32 = vpack.c.bf16 %v1172_v31, %v1171_v29  ;;  %v1978_v40 = vpack.c.bf16 %v1176_v39, %v1175_v37 }
  0x93   :  { %1933 = vmatprep.subr.bf16.mxu0 %v1932_v42 }
  0x94   :  { %1576 = vmatmul.mubr.f32.gmra.mrb[4].mxu1 %v311_v45 }
  0x95   :  { %1688 = vmatmul.mubr.f32.gmra.mrb[4].mxu0 %v699_v46  ;;  %1578 = vmatprep.mubr.f32.mxu1 %v312_v47 }
  0x96   :  { %1935 = vmatpush3.bf16.msra.mxu0 %v1932_v42  ;;  %1690 = vmatprep.mubr.f32.mxu0 %v700_v48 }
  0x97   :  { %1937 = vmatprep.subr.bf16.mxu0 %v1936_v50 }
  0x98   :  { %1579 = vmatmul.mubr.f32.gmra.mrb[6].mxu1 %v313_v53 }
  0x99   :  { %1691 = vmatmul.mubr.f32.gmra.mrb[6].mxu0 %v701_v54  ;;  %1581 = vmatprep.mubr.f32.mxu1 %v314_v55 }
  0x9a   :  { %1939 = vmatpush3.bf16.msra.mxu0 %v1936_v50  ;;  %1693 = vmatprep.mubr.f32.mxu0 %v702_v56 }
  0x9b   :  { %1941 = vmatprep.subr.bf16.mxu0 %v1940_v57 }
  0x9c   :  { %1582 = vmatmul.mubr.f32.gmra.mrb[8].mxu1 %v315_v60 }
  0x9d   :  { %1694 = vmatmul.mubr.f32.gmra.mrb[8].mxu0 %v703_v62  ;;  %1584 = vmatprep.mubr.f32.mxu1 %v316_v63 }
  0x9e   :  { %1943 = vmatpush3.bf16.msra.mxu0 %v1940_v57  ;;  %1696 = vmatprep.mubr.f32.mxu0 %v704_v2 }
  0x9f   :  { %1945 = vmatprep.subr.bf16.mxu0 %v1944_v3 }
  0xa0   :  { %1585 = vmatmul.mubr.f32.gmra.mrb[10].mxu1 %v317_v6 }
  0xa1   :  { %1697 = vmatmul.mubr.f32.gmra.mrb[10].mxu0 %v705_v7  ;;  %1587 = vmatprep.mubr.f32.mxu1 %v318_v8 }
  0xa2   :  { %1947 = vmatpush3.bf16.msra.mxu0 %v1944_v3  ;;  %1699 = vmatprep.mubr.f32.mxu0 %v706_v9 }
  0xa3   :  { %1949 = vmatprep.subr.bf16.mxu0 %v1948_v10 }
  0xa4   :  { %1588 = vmatmul.mubr.f32.gmra.mrb[12].mxu1 %v319_v13 }
  0xa5   :  { %1700 = vmatmul.mubr.f32.gmra.mrb[12].mxu0 %v707_v14  ;;  %1590 = vmatprep.mubr.f32.mxu1 %v320_v15 }
  0xa6   :  { %1951 = vmatpush3.bf16.msra.mxu0 %v1948_v10  ;;  %1702 = vmatprep.mubr.f32.mxu0 %v708_v16 }
  0xa7   :  { %1953 = vmatprep.subr.bf16.mxu0 %v1952_v17 }
  0xa8   :  { %1591 = vmatmul.mubr.f32.gmra.mrb[14].mxu1 %v321_v18 }
  0xa9   :  { %1703 = vmatmul.mubr.f32.gmra.mrb[14].mxu0 %v709_v19  ;;  %1793 = vmatprep.mubr.msk.f32.mxu1 %vm2196_vm0, %v2194_v0 }
  0xaa   :  { %1955 = vmatpush3.bf16.msra.mxu0 %v1952_v17  ;;  %1737 = vmatprep.mubr.f32.mxu0 %v2323_v27  ;;  %v1161_v27 = vld [vmem:[#allocation9] sm:$0xff] }
  0xad   :  { %1738 = vmatmul.mubr.f32.vlgmr.msra.gmra.mrb[0].mxu0 %v2194_v0 }
  0xae   :  { %1740 = vmatprep.mubr.f32.mxu0 %v2326_v30  ;;  %v1162_v30 = vld [vmem:[#allocation9 + $0x8] sm:$0xff] }
  0xb1   :  { %1741 = vmatmul.mubr.f32.gmra.mrb[2].mxu0 %v2194_v0 }
  0xb2   :  { %1743 = vmatprep.mubr.f32.mxu0 %v2329_v35  ;;  %v1957_v35 = vpack.c.bf16 %v1162_v30, %v1161_v27 }
  0xb5   :  { %1744 = vmatmul.mubr.f32.gmra.mrb[4].mxu0 %v2194_v0 }
  0xb6   :  { %1746 = vmatprep.mubr.f32.mxu0 %v2332_v38  ;;  %v2195_v38 = vmov 0.0|0.0  }
  0xb7   :  { %1956 = vmatprep.subr.bf16.mxu1 %v2195_v38 }
  0xb8   :  { %1958 = vmatpush3.bf16.msra.mxu1 %v1957_v35 }
  0xb9   :  { %1747 = vmatmul.mubr.f32.gmra.mrb[6].mxu0 %v2194_v0  ;;  %1959 = vmatprep.subr.bf16.mxu1 %v2195_v38 }
  0xba   :  { %1749 = vmatprep.mubr.f32.mxu0 %v2335_v41  ;;  %v1163_v41 = vld [vmem:[#allocation9 + $0x10] sm:$0xff] }
  0xbd   :  { %1750 = vmatmul.mubr.f32.gmra.mrb[8].mxu0 %v2194_v0 }
  0xbe   :  { %1752 = vmatprep.mubr.f32.mxu0 %v2338_v49  ;;  %v1960_v49 = vpack.c.bf16 %v1164_v20, %v1163_v41 }
  0xc0   :  { %1961 = vmatpush3.bf16.msra.mxu1 %v1960_v49 }
  0xc1   :  { %1753 = vmatmul.mubr.f32.gmra.mrb[10].mxu0 %v2194_v0  ;;  %1962 = vmatprep.subr.bf16.mxu1 %v2195_v38 }
  0xc2   :  { %1755 = vmatprep.mubr.f32.mxu0 %v2341_v61  ;;  %v1166_v61 = vld [vmem:[#allocation9 + $0x28] sm:$0xff] }
  0xc3   :  { %v1963_v22 = vpack.c.bf16 %v1166_v61, %v1165_v21 }
  0xc5   :  { %1756 = vmatmul.mubr.f32.gmra.mrb[12].mxu0 %v2194_v0  ;;  %1964 = vmatpush3.bf16.msra.mxu1 %v1963_v22 }
  0xc6   :  { %1758 = vmatprep.mubr.f32.mxu0 %v2344_v1  ;;  %1965 = vmatprep.subr.bf16.mxu1 %v2195_v38  ;;  %v1167_v1 = vld [vmem:[#allocation9 + $0x30] sm:$0xff] }
  0xc7   :  { %v1966_v24 = vpack.c.bf16 %v1168_v23, %v1167_v1 }
  0xc9   :  { %1759 = vmatmul.mubr.f32.gmra.mrb[14].mxu0 %v2194_v0  ;;  %1967 = vmatpush3.bf16.msra.mxu1 %v1966_v24  ;;  %v2370_v0 = vld [vmem:[#allocation8 + $0x8] sm:$0xff] }
  0xca   :  { %1968 = vmatprep.subr.bf16.mxu1 %v2195_v38 }
  0xcd   :  { %1970 = vmatpush3.bf16.msra.mxu1 %v1969_v28 }
  0xce   :  { %1971 = vmatprep.subr.bf16.mxu1 %v2195_v38 }
  0xd1   :  { %1973 = vmatpush3.bf16.msra.mxu1 %v1972_v32 }
  0xd2   :  { %1974 = vmatprep.subr.bf16.mxu1 %v2195_v38 }
  0xd5   :  { %1976 = vmatpush3.bf16.msra.mxu1 %v1975_v36 }
  0xd6   :  { %1977 = vmatprep.subr.bf16.mxu1 %v2195_v38 }
  0xd9   :  { %1979 = vmatpush3.bf16.msra.mxu1 %v1978_v40  ;;  %v2389_v40 = vld [vmem:[%s2427_s2] ss:$0 sm:$0xff] }
 0x15f   :  { %v1571_v42 = vpop.f32.mrb[0].mxu1 }
 0x160   :  { %v405_v43 = vpop.f32.mrb[1].mxu1  ;;  %v1980_v60 = vadd.f32 %v1571_v42, %v2370_v0 }
 0x161   :  { %v1982_v62 = vadd.f32 %v405_v43, %v2374_v59 }
 0x163   :  { %v1574_v44 = vpop.f32.mrb[2].mxu1 }
 0x164   :  { %v415_v45 = vpop.f32.mrb[3].mxu1  ;;  %v1984_v5 = vadd.f32 %v1574_v44, %v2370_v0 }
 0x165   :  { %v1986_v6 = vadd.f32 %v415_v45, %v2374_v59 }
 0x167   :  { %v1577_v46 = vpop.f32.mrb[4].mxu1 }
 0x168   :  { %v425_v47 = vpop.f32.mrb[5].mxu1  ;;  %v1988_v13 = vadd.f32 %v1577_v46, %v2370_v0 }
 0x169   :  { %v1990_v14 = vadd.f32 %v425_v47, %v2374_v59 }
 0x16b   :  { %v1580_v48 = vpop.f32.mrb[6].mxu1 }
 0x16c   :  { %v435_v50 = vpop.f32.mrb[7].mxu1  ;;  %v1992_v38 = vadd.f32 %v1580_v48, %v2370_v0 }
 0x16d   :  { %v1994_v41 = vadd.f32 %v435_v50, %v2374_v59 }
 0x16f   :  { %v1583_v51 = vpop.f32.mrb[8].mxu1 }
 0x170   :  { %v445_v52 = vpop.f32.mrb[9].mxu1  ;;  %v1996_v28 = vadd.f32 %v1583_v51, %v2370_v0 }
 0x171   :  { %v1998_v34 = vadd.f32 %v445_v52, %v2374_v59 }
 0x173   :  { %v1586_v53 = vpop.f32.mrb[10].mxu1 }
 0x174   :  { %v455_v54 = vpop.f32.mrb[11].mxu1  ;;  %v2000_v45 = vadd.f32 %v1586_v53, %v2370_v0 }
 0x175   :  { %v2002_v47 = vadd.f32 %v455_v54, %v2374_v59 }
 0x177   :  { %v2364_v55 = vpop.f32.mrb[12].mxu1 }
 0x178   :  { %v2366_v56 = vpop.f32.mrb[13].mxu1  ;;  %v2004_v53 = vadd.f32 %v2364_v55, %v2370_v0 }
 0x17b   :  { %v2368_v57 = vpop.f32.mrb[14].mxu1 }
 0x17c   :  { %v2372_v58 = vpop.f32.mrb[15].mxu1  ;;  %v2008_v55 = vadd.f32 %v2368_v57, %v2370_v0 }
 0x180   :  { %v1739_v63 = vpop.f32.mrb[0].mxu0 }
 0x181   :  { %v1981_v2 = vadd.f32 %v1980_v60, %v1739_v63  ;;  %v987_v3 = vpop.f32.mrb[1].mxu0 }
 0x182   :  { %v1983_v4 = vadd.f32 %v1982_v62, %v987_v3 }
 0x184   :  { %v1082_v7 = vmax.f32 %v1983_v4, %v1981_v2  ;;  %v1742_v8 = vpop.f32.mrb[2].mxu0 }
 0x185   :  { %v1985_v9 = vadd.f32 %v1984_v5, %v1742_v8  ;;  %v997_v10 = vpop.f32.mrb[3].mxu0 }
 0x186   :  { %v1083_v11 = vrot.slane %v1082_v7, 4  ;;  %v1987_v12 = vadd.f32 %v1986_v6, %v997_v10 }
 0x188   :  { %v1084_v15 = vmax.f32 %v1082_v7, %v1083_v11  ;;  %v1089_v16 = vmax.f32 %v1987_v12, %v1985_v9  ;;  %v1745_v17 = vpop.f32.mrb[4].mxu0  ;;  %v2006_v12 = vadd.f32 %v2366_v56, %v2374_v59 }
 0x189   :  { %v1989_v18 = vadd.f32 %v1988_v13, %v1745_v17  ;;  %v1007_v19 = vpop.f32.mrb[5].mxu0 }
 0x18a   :  { %v1085_v27 = vrot.slane %v1084_v15, 2  ;;  %v1090_v30 = vrot.slane %v1089_v16, 4  ;;  %v1991_v35 = vadd.f32 %v1990_v14, %v1007_v19 }
 0x18c   :  { %v1086_v20 = vmax.f32 %v1084_v15, %v1085_v27  ;;  %v1091_v49 = vmax.f32 %v1089_v16, %v1090_v30  ;;  %v1096_v21 = vmax.f32 %v1991_v35, %v1989_v18  ;;  %v1748_v61 = vpop.f32.mrb[6].mxu0  ;;  %v2010_v30 = vadd.f32 %v2372_v58, %v2374_v59 }
 0x18d   :  { %v1993_v22 = vadd.f32 %v1992_v38, %v1748_v61  ;;  %v1017_v1 = vpop.f32.mrb[7].mxu0 }
 0x18e   :  { %v1087_v23 = vrot.slane %v1086_v20, 1  ;;  %v1092_v24 = vrot.slane %v1091_v49, 2  ;;  %v1097_v25 = vrot.slane %v1096_v21, 4  ;;  %v1995_v26 = vadd.f32 %v1994_v41, %v1017_v1 }
 0x190   :  { %v1093_v29 = vmax.f32 %v1091_v49, %v1092_v24  ;;  %v1098_v31 = vmax.f32 %v1096_v21, %v1097_v25  ;;  %v1103_v32 = vmax.f32 %v1995_v26, %v1993_v22  ;;  %v1751_v33 = vpop.f32.mrb[8].mxu0  ;;  %v1088_v36 = vmax.f32 %v1086_v20, %v1087_v23 }
 0x191   :  { %v1997_v37 = vadd.f32 %v1996_v28, %v1751_v33  ;;  %v1027_v39 = vpop.f32.mrb[9].mxu0 }
 0x192   :  { %v1094_v42 = vrot.slane %v1093_v29, 1  ;;  %v1099_v43 = vrot.slane %v1098_v31, 2  ;;  %v1104_v44 = vrot.slane %v1103_v32, 4  ;;  %v1999_v46 = vadd.f32 %v1998_v34, %v1027_v39 }
 0x193   :  { %v1145_v60 = vadd.f32 %v2389_v40, %v1088_v36 }
 0x194   :  { %v1095_v48 = vmax.f32 %v1093_v29, %v1094_v42  ;;  %v1100_v50 = vmax.f32 %v1098_v31, %v1099_v43  ;;  %v1105_v51 = vmax.f32 %v1103_v32, %v1104_v44  ;;  %v1754_v52 = vpop.f32.mrb[10].mxu0  ;;  %v1110_v62 = vmax.f32 %v1999_v46, %v1997_v37 }
 0x195   :  { %v2001_v63 = vadd.f32 %v2000_v45, %v1754_v52  ;;  %v1037_v2 = vpop.f32.mrb[11].mxu0  ;;  %v1153_v13 = vmax.f32 %v1145_v60, 0.0 }
 0x196   :  { %v1146_v3 = vadd.f32 %v2389_v40, %v1095_v48  ;;  %v1101_v4 = vrot.slane %v1100_v50, 1  ;;  %v1106_v5 = vrot.slane %v1105_v51, 2  ;;  %v2003_v6 = vadd.f32 %v2002_v47, %v1037_v2 }
 0x197   :  { %v1111_v7 = vrot.slane %v1110_v62, 4 }
 0x198   :  { %v1154_v54 = vmax.f32 %v1146_v3, 0.0  ;;  %v1102_v8 = vmax.f32 %v1100_v50, %v1101_v4  ;;  %v1107_v9 = vmax.f32 %v1105_v51, %v1106_v5  ;;  %v1117_v10 = vmax.f32 %v2003_v6, %v2001_v63  ;;  %v1757_v11 = vpop.f32.mrb[12].mxu0 }
 0x199   :  { %v1112_v14 = vmax.f32 %v1110_v62, %v1111_v7  ;;  %v2005_v15 = vadd.f32 %v2004_v53, %v1757_v11  ;;  %v1047_v16 = vpop.f32.mrb[13].mxu0 }
 0x19a   :  { %v1192_v17 = vrot.slane %v1154_v54, 7  ;;  %v1147_v18 = vadd.f32 %v2389_v40, %v1102_v8  ;;  %v1108_v19 = vrot.slane %v1107_v9, 1  ;;  %v1118_v27 = vrot.slane %v1117_v10, 4 }
 0x19b   :  { %v1113_v35 = vrot.slane %v1112_v14, 2  ;;  %v2007_v38 = vadd.f32 %v2006_v12, %v1047_v16 }
 0x19c   :  { %v1194_v41 = vsel %vm1193_vm1, %v1192_v17, %v1153_v13  ;;  %v1155_v56 = vmax.f32 %v1147_v18, 0.0  ;;  %v1109_v20 = vmax.f32 %v1107_v9, %v1108_v19  ;;  %v1119_v49 = vmax.f32 %v1117_v10, %v1118_v27  ;;  %v1760_v21 = vpop.f32.mrb[14].mxu0  ;;  %v1303_v13 = vld [vmem:[%s2430_s5] ss:$0 sm:$0xff] }
 0x19d   :  { %v1114_v61 = vmax.f32 %v1112_v14, %v1113_v35  ;;  %v1124_v22 = vmax.f32 %v2007_v38, %v2005_v15  ;;  %v2009_v1 = vadd.f32 %v2008_v55, %v1760_v21  ;;  %v1057_v23 = vpop.f32.mrb[15].mxu0 }
 0x19e   :  { %v1195_v24 = vrot.slane %v1155_v56, 6  ;;  %v1148_v25 = vadd.f32 %v2389_v40, %v1109_v20  ;;  %v1120_v57 = vrot.slane %v1119_v49, 2  ;;  %v2011_v0 = vadd.f32 %v2010_v30, %v1057_v23 }
 0x19f   :  { %v1115_v26 = vrot.slane %v1114_v61, 1  ;;  %v1125_v58 = vrot.slane %v1124_v22, 4 }
 0x1a0   :  { %v1197_v59 = vsel %vm1196_vm2, %v1195_v24, %v1194_v41  ;;  %v1156_v28 = vmax.f32 %v1148_v25, 0.0  ;;  %v1121_v29 = vmax.f32 %v1119_v49, %v1120_v57  ;;  %v1131_v31 = vmax.f32 %v2011_v0, %v2009_v1 }
 0x1a1   :  { %v1116_v32 = vmax.f32 %v1114_v61, %v1115_v26  ;;  %v1126_v33 = vmax.f32 %v1124_v22, %v1125_v58 }
 0x1a2   :  { %v1198_v34 = vrot.slane %v1156_v28, 5  ;;  %v1122_v36 = vrot.slane %v1121_v29, 1  ;;  %v1132_v37 = vrot.slane %v1131_v31, 4 }
 0x1a3   :  { %v1149_v39 = vadd.f32 %v2389_v40, %v1116_v32  ;;  %v1127_v42 = vrot.slane %v1126_v33, 2 }
 0x1a4   :  { %v1123_v43 = vmax.f32 %v1121_v29, %v1122_v36  ;;  %v1133_v44 = vmax.f32 %v1131_v31, %v1132_v37  ;;  %v1200_v45 = vsel %vm1199_vm3, %v1198_v34, %v1197_v59 }
 0x1a5   :  { %v1157_v46 = vmax.f32 %v1149_v39, 0.0  ;;  %v1128_v47 = vmax.f32 %v1126_v33, %v1127_v42 }
 0x1a6   :  { %v1150_v48 = vadd.f32 %v2389_v40, %v1123_v43  ;;  %v1134_v50 = vrot.slane %v1133_v44, 2 }
 0x1a7   :  { %v1201_v51 = vrot.slane %v1157_v46, 4  ;;  %v1129_v52 = vrot.slane %v1128_v47, 1 }
 0x1a8   :  { %v1158_v60 = vmax.f32 %v1150_v48, 0.0  ;;  %v1135_v62 = vmax.f32 %v1133_v44, %v1134_v50 }
 0x1a9   :  { %v1130_v63 = vmax.f32 %v1128_v47, %v1129_v52  ;;  %v1203_v2 = vsel %vm1202_vm4, %v1201_v51, %v1200_v45 }
 0x1aa   :  { %v1204_v3 = vrot.slane %v1158_v60, 3  ;;  %v1136_v4 = vrot.slane %v1135_v62, 1 }
 0x1ab   :  { %v1151_v5 = vadd.f32 %v2389_v40, %v1130_v63 }
 0x1ac   :  { %v1137_v6 = vmax.f32 %v1135_v62, %v1136_v4  ;;  %v1206_v53 = vsel %vm1205_vm5, %v1204_v3, %v1203_v2 }
 0x1ad   :  { %v1159_v7 = vmax.f32 %v1151_v5, 0.0 }
 0x1ae   :  { %v1152_v54 = vadd.f32 %v2389_v40, %v1137_v6 }
 0x1af   :  { %v1207_v8 = vrot.slane %v1159_v7, 2 }
 0x1b0   :  { %v1160_v9 = vmax.f32 %v1152_v54, 0.0 }
 0x1b1   :  { %v1209_v10 = vsel %vm1208_vm6, %v1207_v8, %v1206_v53 }
 0x1b2   :  { %v1210_v11 = vrot.slane %v1160_v9, 1 }
 0x1b4   :  { %v1212_v12 = vsel %vm1211_vm7, %v1210_v11, %v1209_v10 }
 0x1b5   :  { %1794 = vmatmul.mubr.f32.vlgmr.msra.gmra.mrb[16].mxu1 %v1212_v12 }
 0x288   :  { %v1280_v14 = vpop.f32.mrb[16].mxu1 }
 0x289   :  { %v1281_v15 = vadd.f32 %v1303_v13, %v1280_v14  ;;  %v1795_v16 = vpop.f32.mrb[17].mxu1 }
 0x28b   :  { %1284 = vst [vmem:[#allocation11] sm:$0xff] %v1281_v15 }
 0x28c   :  { %2169 = shalt.err (!%p2166_p8)
}
 0x28d   :  { %s2170_s27 = scalar_lea.hbm %s2431_s6, 128 }
 0x28e   :  { %p2171_p9 = scmp.ne.s32.totalorder %s2431_s6, %s2170_s27  ;;  %p2174_p10 = scmp.lt.u32.totalorder %s2170_s27, %s2431_s6 }
 0x290   :  { %p2176_p11 = pnand %p2174_p10, %p2171_p9 }
 0x292   :  { %2179 = shalt.err (!%p2176_p11)
}
 0x293   :  { %1294 = dma.vmem_to_hbm [thread:$0]  %s1292_s22, 128, %s2431_s6, [#allocation5]  }
 0x294   :  { %2186 = dma.done.wait [#allocation5], 128  }
 0x295   :  { %2187 = vsyncadd [#allocation5], 4294967168 }
 0x296   :  { %1298 = vsyncpa [#allocation4], 1 }
 0x297   :  { %1299 = vsyncpa [#allocation7], 1 }
 0x298   :  { %1300 = vsyncpa [#allocation10], 1 }
 0x299   :  { %1301 = vsyncpa [#allocation5], 1 }

</bundles_post_ra>
